<compile_context>
chip_gen: v7x
topology: tpu7x:2x2x1
jax: 0.10.0
libtpu: 0.0.40
codegen_flags: <defaults>
</compile_context>

<pallas_src>
import jax
import jax.numpy as jnp
from jax.experimental import pallas as pl
from jax.experimental.pallas import tpu as pltpu


def _patchdown_kernel(x_ref, w_ref, b_ref, o_ref):
    # x_ref: (tr, 2, Wo, 2C)  -- (out_row, kh, out_col, kw*C + c)
    # w_ref: (2, 2C, OCp)     -- per-kh projection, feature order (kw, c)
    # b_ref: (1, 1, OCp)
    # o_ref: (tr, Wo, OCp)
    tr, _, wo, c2 = x_ref.shape
    ocp = o_ref.shape[-1]
    top = x_ref[:, 0, :, :].reshape(tr * wo, c2)   # kh = 0 rows of every patch
    bot = x_ref[:, 1, :, :].reshape(tr * wo, c2)   # kh = 1 rows of every patch
    acc = jnp.dot(top, w_ref[0], preferred_element_type=jnp.float32)
    acc = acc + jnp.dot(bot, w_ref[1], preferred_element_type=jnp.float32)
    acc = acc.reshape(tr, wo, ocp) + b_ref[...]    # bias add in f32
    o_ref[...] = acc.astype(o_ref.dtype)


def _choose_row_tile(R, Wo, C2, OCp, in_itemsize, out_itemsize,
                     target_block_rows, vmem_budget_bytes=10 * 1024 * 1024):
    """Pick how many output rows (of Wo pixels each) one grid step processes."""
    # VMEM footprint per output row, with (8,128) tile padding and double
    # buffering of both the input and output blocks.
    c2_pad = ((C2 + 127) // 128) * 128
    wo_pad = ((Wo + 7) // 8) * 8
    per_row = 2 * (2 * wo_pad * c2_pad * in_itemsize) + 2 * (wo_pad * OCp * out_itemsize)
    max_tr = max(1, vmem_budget_bytes // per_row)
    # Aim for ~target_block_rows matmul rows per step (amortizes ~0.35us/step).
    max_tr = min(max_tr, max(1, target_block_rows // max(Wo, 1)))
    max_tr = min(max_tr, R)
    # Keep the grid multi-step so blocks pipeline and v7x can use both cores.
    if R >= 2:
        max_tr = min(max_tr, max(1, R // 2))
    # Largest divisor of R that fits (exact blocks -> no input padding copy).
    for tr in range(int(max_tr), 0, -1):
        if R % tr == 0:
            return tr
    return 1


def patch_down(x, weight, bias, *, target_block_rows=1024,
               compute_dtype=None, out_dtype=None):
    """x: (B, H, W, C). weight: (OC, IC, 2, 2) (PyTorch conv layout). bias: (OC,).
    Returns (B, H//2, W//2, OC).

    compute_dtype: optionally cast matmul operands (e.g. jnp.bfloat16 on
    v6e/v7x) -- accumulation stays f32.  out_dtype: output dtype (defaults to
    x.dtype)."""
    B, H, W, C = x.shape
    OC, IC, KH, KW = weight.shape
    assert IC == C and KH == 2 and KW == 2
    assert H % 2 == 0 and W % 2 == 0

    Ho, Wo = H // 2, W // 2
    C2 = 2 * C                    # (kw, c) fused feature axis
    R = B * Ho                    # total output rows
    OCp = ((OC + 127) // 128) * 128   # lane-dense output width
    out_dtype = out_dtype if out_dtype is not None else x.dtype

    if compute_dtype is not None:
        x = x.astype(compute_dtype)

    # Free reshape (row-major regroup, no transpose): (B,H,W,C)->(B*Ho,2,Wo,2C)
    x4 = x.reshape(R, 2, Wo, C2)

    # Weight (OC, IC, KH, KW) -> (KH, KW*IC, OC), feature order (kw, c) matches x4.
    w_mat = jnp.transpose(weight, (2, 3, 1, 0)).reshape(KH, KW * IC, OC)
    b_mat = bias.reshape(1, 1, OC)
    if OCp != OC:
        w_mat = jnp.pad(w_mat, ((0, 0), (0, 0), (0, OCp - OC)))
        b_mat = jnp.pad(b_mat, ((0, 0), (0, 0), (0, OCp - OC)))
    if compute_dtype is not None:
        w_mat = w_mat.astype(compute_dtype)   # bias stays f32

    tr = _choose_row_tile(R, Wo, C2, OCp,
                          jnp.dtype(x4.dtype).itemsize,
                          jnp.dtype(out_dtype).itemsize,
                          target_block_rows)
    grid = (R // tr,)

    flops = 2 * (R * Wo) * (KH * KW * C) * OC
    bytes_accessed = (x4.size * jnp.dtype(x4.dtype).itemsize
                      + w_mat.size * jnp.dtype(w_mat.dtype).itemsize
                      + b_mat.size * jnp.dtype(b_mat.dtype).itemsize
                      + R * Wo * OCp * jnp.dtype(out_dtype).itemsize)

    out = pl.pallas_call(
        _patchdown_kernel,
        out_shape=jax.ShapeDtypeStruct((R, Wo, OCp), out_dtype),
        grid_spec=pltpu.PrefetchScalarGridSpec(
            num_scalar_prefetch=0,
            grid=grid,
            in_specs=[
                pl.BlockSpec((tr, 2, Wo, C2), lambda i: (i, 0, 0, 0)),
                pl.BlockSpec((KH, KW * IC, OCp), lambda i: (0, 0, 0)),
                pl.BlockSpec((1, 1, OCp), lambda i: (0, 0, 0)),
            ],
            out_specs=pl.BlockSpec((tr, Wo, OCp), lambda i: (i, 0, 0)),
        ),
        compiler_params=pltpu.CompilerParams(
            dimension_semantics=("parallel",),
            vmem_limit_bytes=32 * 1024 * 1024,
        ),
        cost_estimate=pl.CostEstimate(
            flops=flops, transcendentals=0, bytes_accessed=bytes_accessed),
    )(x4, w_mat, b_mat)

    out = out.reshape(B, Ho, Wo, OCp)
    if OCp != OC:
        out = out[..., :OC]
    return out


def init_patchdown_params(key, in_channels, out_channels):
    # kaiming_normal_(mode='fan_out', nonlinearity='relu'):
    #   fan_out = out_channels * KH * KW, std = sqrt(2 / fan_out)
    kh = kw = 2
    fan_out = out_channels * kh * kw
    std = (2.0 / fan_out) ** 0.5
    weight = std * jax.random.normal(
        key, (out_channels, in_channels, kh, kw), dtype=jnp.float32
    )
    bias = jnp.zeros((out_channels,), dtype=jnp.float32)
    return weight, bias


def _reference_patchdown(x, weight, bias):
    # Pure-JAX reference (lax conv) for sanity check.
    x_nchw = jnp.transpose(x, (0, 3, 1, 2))
    y = jax.lax.conv_general_dilated(
        x_nchw, weight, window_strides=(2, 2), padding="VALID",
        dimension_numbers=("NCHW", "OIHW", "NCHW"),
    )
    y = y + bias[None, :, None, None]
    return jnp.transpose(y, (0, 2, 3, 1))


if __name__ == "__main__":
    key = jax.random.PRNGKey(0)
    k_x, k_w = jax.random.split(key)

    B, H, W, C = 2, 16, 16, 4
    out_channels = 8

    x = jax.random.normal(k_x, (B, H, W, C), dtype=jnp.float32)
    weight, bias = init_patchdown_params(k_w, C, out_channels)

    y = patch_down(x, weight, bias)
    y = jax.block_until_ready(y)

    y_ref = jax.block_until_ready(_reference_patchdown(x, weight, bias))
    assert y.shape == (B, H // 2, W // 2, out_channels)
    assert jnp.allclose(y, y_ref, atol=1e-5, rtol=1e-5)

    # TODO(synk): on v6e/v7x pass compute_dtype=jnp.bfloat16 (and optionally
    # out_dtype=jnp.bfloat16) for the bandwidth-optimal production path.
    print("KERNEL_OK")
</pallas_src>

<mosaic_0001>
module attributes {stable_mosaic.version = 11 : i64} {
  func.func @_patchdown_kernel(%arg0: i32, %arg1: memref<8x2x8x8xf32, #tpu.memory_space<vmem>>, %arg2: memref<2x8x128xf32, #tpu.memory_space<vmem>>, %arg3: memref<1x1x128xf32, #tpu.memory_space<vmem>>, %arg4: memref<8x8x128xf32, #tpu.memory_space<vmem>>) attributes {dimension_semantics = [#tpu.dimension_semantics<parallel>], iteration_bounds = array<i64: 2>, scalar_prefetch = 0 : i64, scratch_operands = 0 : i64, tpu.core_type = #tpu.core_type<tc>, window_params = [{transform_indices = @transform_0, window_bounds = array<i64: 8, 2, 8, 8>}, {pipeline_mode = #tpu.pipeline_mode<synchronous>, transform_indices = @transform_1, window_bounds = array<i64: 2, 8, 128>}, {pipeline_mode = #tpu.pipeline_mode<synchronous>, transform_indices = @transform_2, window_bounds = array<i64: 1, 1, 128>}, {transform_indices = @transform_3, window_bounds = array<i64: 8, 8, 128>}]} {
    %c0 = arith.constant 0 : index
    %c0_0 = arith.constant 0 : index
    %c0_1 = arith.constant 0 : index
    %c0_2 = arith.constant 0 : index
    %0 = vector.load %arg1[%c0, %c0_0, %c0_1, %c0_2] : memref<8x2x8x8xf32, #tpu.memory_space<vmem>>, vector<8x1x8x8xf32>
    %1 = vector.shape_cast %0 : vector<8x1x8x8xf32> to vector<8x8x8xf32>
    %2 = vector.shape_cast %1 : vector<8x8x8xf32> to vector<64x8xf32>
    %c0_3 = arith.constant 0 : index
    %c1 = arith.constant 1 : index
    %c0_4 = arith.constant 0 : index
    %c0_5 = arith.constant 0 : index
    %3 = vector.load %arg1[%c0_3, %c1, %c0_4, %c0_5] : memref<8x2x8x8xf32, #tpu.memory_space<vmem>>, vector<8x1x8x8xf32>
    %4 = vector.shape_cast %3 : vector<8x1x8x8xf32> to vector<8x8x8xf32>
    %5 = vector.shape_cast %4 : vector<8x8x8xf32> to vector<64x8xf32>
    %c0_6 = arith.constant 0 : index
    %c0_7 = arith.constant 0 : index
    %c0_8 = arith.constant 0 : index
    %6 = vector.load %arg2[%c0_6, %c0_7, %c0_8] : memref<2x8x128xf32, #tpu.memory_space<vmem>>, vector<1x8x128xf32>
    %7 = vector.shape_cast %6 : vector<1x8x128xf32> to vector<8x128xf32>
    %cst = arith.constant dense<0.000000e+00> : vector<64x128xf32>
    %8 = tpu.matmul %2, %7, %cst {dimension_numbers = #tpu.dot_dimension_numbers<[1], [0], [0], [1], [0, 0, 1, 1], [], []>} : vector<64x8xf32>, vector<8x128xf32>, vector<64x128xf32> -> vector<64x128xf32>
    %c1_9 = arith.constant 1 : index
    %c0_10 = arith.constant 0 : index
    %c0_11 = arith.constant 0 : index
    %9 = vector.load %arg2[%c1_9, %c0_10, %c0_11] : memref<2x8x128xf32, #tpu.memory_space<vmem>>, vector<1x8x128xf32>
    %10 = vector.shape_cast %9 : vector<1x8x128xf32> to vector<8x128xf32>
    %cst_12 = arith.constant dense<0.000000e+00> : vector<64x128xf32>
    %11 = tpu.matmul %5, %10, %cst_12 {dimension_numbers = #tpu.dot_dimension_numbers<[1], [0], [0], [1], [0, 0, 1, 1], [], []>} : vector<64x8xf32>, vector<8x128xf32>, vector<64x128xf32> -> vector<64x128xf32>
    %12 = arith.addf %8, %11 : vector<64x128xf32>
    %13 = vector.shape_cast %12 : vector<64x128xf32> to vector<8x8x128xf32>
    %c0_13 = arith.constant 0 : index
    %c0_14 = arith.constant 0 : index
    %c0_15 = arith.constant 0 : index
    %14 = vector.load %arg3[%c0_13, %c0_14, %c0_15] : memref<1x1x128xf32, #tpu.memory_space<vmem>>, vector<1x1x128xf32>
    %15 = vector.broadcast %14 : vector<1x1x128xf32> to vector<8x8x128xf32>
    %16 = arith.addf %13, %15 : vector<8x8x128xf32>
    %c0_16 = arith.constant 0 : index
    %c0_17 = arith.constant 0 : index
    %c0_18 = arith.constant 0 : index
    %17 = vector.load %arg4[%c0_16, %c0_17, %c0_18] : memref<8x8x128xf32, #tpu.memory_space<vmem>>, vector<8x8x128xf32>
    tpu.vector_store %arg4[%c0_16, %c0_17, %c0_18], %16 {strides = array<i32>} : memref<8x8x128xf32, #tpu.memory_space<vmem>>, vector<8x8x128xf32>,
    return
  }
  func.func @transform_0(%arg0: i32) -> (i32, i32, i32, i32) {
    %c0_i32 = arith.constant 0 : i32
    %c0_i32_0 = arith.constant 0 : i32
    %c0_i32_1 = arith.constant 0 : i32
    %c0_i32_2 = arith.constant 0 : i32
    return %arg0, %c0_i32, %c0_i32_0, %c0_i32_1 : i32, i32, i32, i32
  }
  func.func @transform_1(%arg0: i32) -> (i32, i32, i32) {
    %c0_i32 = arith.constant 0 : i32
    %c0_i32_0 = arith.constant 0 : i32
    %c0_i32_1 = arith.constant 0 : i32
    %c0_i32_2 = arith.constant 0 : i32
    return %c0_i32, %c0_i32_0, %c0_i32_1 : i32, i32, i32
  }
  func.func @transform_2(%arg0: i32) -> (i32, i32, i32) {
    %c0_i32 = arith.constant 0 : i32
    %c0_i32_0 = arith.constant 0 : i32
    %c0_i32_1 = arith.constant 0 : i32
    %c0_i32_2 = arith.constant 0 : i32
    return %c0_i32, %c0_i32_0, %c0_i32_1 : i32, i32, i32
  }
  func.func @transform_3(%arg0: i32) -> (i32, i32, i32) {
    %c0_i32 = arith.constant 0 : i32
    %c0_i32_0 = arith.constant 0 : i32
    %c0_i32_1 = arith.constant 0 : i32
    return %arg0, %c0_i32, %c0_i32_0 : i32, i32, i32
  }
}

</mosaic_0001>

<bundles_post_ra>
// kernel: tpu_custom_call.1
= control target key start
LH: loop header
LB: loop body
LE: loop exit
PB: predicated region body
PF: predicated region fallthrough
CT: control target
= control target key end

     0   :  { %8 = vsyncpa [#allocation3], 0  ;;  %s918_s0 = inlined_call_operand.vmem [shape: f32[16,2,8,8], index: 0, kind: input, shape index: {}]   ;;  %s919_s1 = inlined_call_operand.vmem [shape: f32[2,8,128], index: 1, kind: input, shape index: {}]   ;;  %s920_s2 = inlined_call_operand.vmem [shape: f32[1,1,128], index: 2, kind: input, shape index: {}]   ;;  %s921_s3 = inlined_call_operand.hbm [shape: f32[16,8,128], index: 3, kind: output, shape index: {}]  }
   0x1   :  { %10 = vsyncpa [#allocation3 + $0x1], 0  ;;  %s776_s12 = smov 0   ;;  %s778_s13 = smov 0  }
   0x2   :  { %s780_s14 = smov 0   ;;  %s782_s15 = smov 0  }
   0x3 LB: > { %s797_s16 = sadd.s32 4294967295, %s751_s15   ;;  %s553_s17 = sadd.s32 4294967294, %s751_s15   ;;  %s751_s15 = sphi %s782_s15, %s927_s15   ;;  %s747_s14 = sphi %s780_s14, %s926_s14   ;;  %s743_s13 = sphi %s778_s13, %s925_s13   ;;  %s739_s12 = sphi %s776_s12, %s924_s12  }
   0x4   : > { %s801_s18 = sadd.s32 1, %s751_s15   ;;  %s91_s19 = sadd.s32 1, %s747_s14 }
   0x5   : > { %s88_s20 = ssub.s32 %s751_s15, %s801_s18  ;;  %p101_p0 = scmp.ne.s32.totalorder %s747_s14, %s743_s13 }
   0x6   : > { %p89_p1 = scmp.eq.s32.totalorder %s88_s20, 0  ;;  %p102_p2 = scmp.eq.s32.totalorder %s797_s16, 1 }
   0x7   : > { %p107_p3 = scmp.ne.s32.totalorder %s743_s13, %s739_s12  ;;  %p108_p4 = scmp.eq.s32.totalorder %s553_s17, 1 }
   0x8   : > { %s812_s21 = scalar_select %p89_p1, %s747_s14, %s91_s19  }
   0x9   : > { %p814_p5 = por %p102_p2, %p101_p0  ;;  %p818_p6 = por %p108_p4, %p107_p3 }
   0xa   : > { %p556_p7 = scmp.ge.s32.totalorder %s751_s15, 1  ;;  %p142_p8 = scmp.lt.s32.totalorder %s751_s15, 3 }
   0xc   : > { %p143_p9 = pnand %p556_p7, %p142_p8 }
   0xd   : > { %v569_v0 = vld [vmem:[%s919_s1 + $0x8] sm:$0xff] (!%p143_p9)  ;;  %v192_v1 = vld [vmem:[%s919_s1] sm:$0xff] (!%p143_p9)  ;;  %s558_s28 = sshll.u32 (!%p143_p9), %s797_s16, 3  ;;  %vm195_vm0 = vcmask (!%p143_p9), 64512   ;;  %s164_s6 = sand.u32 (!%p143_p9), 1, %s743_s13  }
   0xe   : > { %146 = sbr.rel (%p143_p9) target bundleno = 270 (0x10e), region = 32  ;;  %612 = vmatprep.subr.mxu1 (!%p143_p9), %v569_v0  ;;  %626 = vmatprep.subr.mxu0 (!%p143_p9), %v192_v1  ;;  %p168_p10 = scmp.lt.s32.totalorder (!%p143_p9), %s558_s28, 15  ;;  %v586_v20 = vld [vmem:[%s920_s2] ss:$0 sm:$0xff] (!%p143_p9) }
   0xf   : > { %613 = vmatpush3.msra.mxu1 (!%p143_p9), %v569_v0  ;;  %627 = vmatpush3.msra.mxu0 (!%p143_p9), %v192_v1  ;;  %s557_s7 = sshll.u32 (!%p143_p9), %s164_s6, 6  ;;  %s593_s11 = sshll.u32 (!%p143_p9), %s797_s16, 10 }
  0x10   : > { %s856_s10 = scalar_lea.vmem (!%p143_p9), [#allocation2], %s557_s7  ;;  %s869_s24 = scalar_lea.hbm (!%p143_p9), %s921_s3, %s593_s11 }
  0x11   : > { %s491_s17 = sshll.u32 (!%p143_p9), %s856_s10, 4  ;;  %s877_s16 = scalar_lea.sflag (!%p143_p9), [#allocation3], %s164_s6  ;;  %s871_s17 = int_to_ptr.vmem [resolvable:$true] %s491_s17 }
  0x12   : > { %s689_s25 = scalar_lea.vmem (!%p143_p9), %s871_s17, 1024  ;;  %s753_s26 = smov (!%p143_p9), [#allocation2]  }
  0x13   : > { %p690_p11 = scmp.ne.s32.totalorder (!%p143_p9), %s871_s17, %s689_s25  ;;  %s693_s27 = sshll.u32 (!%p143_p9), %s753_s26, 4  ;;  %s694_s27 = int_to_ptr.vmem [resolvable:$false] %s693_s27 }
  0x14   : > { %p696_p0 = scmp.lt.s32.totalorder (!%p143_p9), %s871_s17, %s694_s27 }
  0x15   : > { %s929_s28 = smov (!%p168_p10, %s558_s28), 15  ;;  %p691_p12 = pnand %p690_p11, %p814_p5 }
  0x16   : > { %s592_s29 = sshll.u32 %s929_s28, 4  ;;  %s695_s28 = scalar_lea.vmem %s694_s27, 2048 }
  0x17   : > { %s172_s5 = scalar_lea.vmem %s918_s0, %s592_s29  ;;  %p692_p13 = pneg %p691_p12 }
  0x18   : > { %v561_v2 = vld [vmem:[%s172_s5 + $0x8] sm:$0xff]  ;;  %v175_v3 = vld [vmem:[%s172_s5] sm:$0xff]  ;;  %v562_v4 = vld [vmem:[%s172_s5 + $0x18] sm:$0xff]  ;;  %p697_p1 = scmp.lt.s32.totalorder %s695_s28, %s689_s25 }
  0x19   : > { %614 = vmatprep.mubr.msk.f32.mxu1 %vm195_vm0, %v561_v2  ;;  %628 = vmatprep.mubr.msk.f32.mxu0 %vm195_vm0, %v175_v3  ;;  %v176_v5 = vld [vmem:[%s172_s5 + $0x10] sm:$0xff]  ;;  %v563_v6 = vld [vmem:[%s172_s5 + $0x28] sm:$0xff]  ;;  %v177_v7 = vld [vmem:[%s172_s5 + $0x20] sm:$0xff] }
  0x1a   : > { %615 = vmatmul.mubr.msk.f32.vlgmr.msra.gmra.mrb[0].mxu1 %vm195_vm0, %v562_v4  ;;  %629 = vmatmul.mubr.msk.f32.vlgmr.msra.gmra.mrb[0].mxu0 %vm195_vm0, %v176_v5  ;;  %v564_v8 = vld [vmem:[%s172_s5 + $0x38] sm:$0xff]  ;;  %v178_v9 = vld [vmem:[%s172_s5 + $0x30] sm:$0xff]  ;;  %v565_v10 = vld [vmem:[%s172_s5 + $0x48] sm:$0xff]  ;;  %p698_p2 = por %p697_p1, %p696_p0 }
  0x1b   : > { %617 = vmatprep.mubr.msk.f32.mxu1 %vm195_vm0, %v563_v6  ;;  %631 = vmatprep.mubr.msk.f32.mxu0 %vm195_vm0, %v177_v7  ;;  %v179_v11 = vld [vmem:[%s172_s5 + $0x40] sm:$0xff]  ;;  %v566_v12 = vld [vmem:[%s172_s5 + $0x58] sm:$0xff]  ;;  %v180_v13 = vld [vmem:[%s172_s5 + $0x50] sm:$0xff] }
  0x1c   : > { %v567_v14 = vld [vmem:[%s172_s5 + $0x68] sm:$0xff]  ;;  %v181_v15 = vld [vmem:[%s172_s5 + $0x60] sm:$0xff]  ;;  %v568_v16 = vld [vmem:[%s172_s5 + $0x78] sm:$0xff]  ;;  %p699_p3 = pnand %p698_p2, %p692_p13 }
  0x1d   : > { %v182_v17 = vld [vmem:[%s172_s5 + $0x70] sm:$0xff] }
  0x1e   : > { %618 = vmatmul.mubr.msk.f32.gmra.mrb[2].mxu1 %vm195_vm0, %v564_v8  ;;  %632 = vmatmul.mubr.msk.f32.gmra.mrb[2].mxu0 %vm195_vm0, %v178_v9 }
  0x1f   : > { %620 = vmatprep.mubr.msk.f32.mxu1 %vm195_vm0, %v565_v10  ;;  %634 = vmatprep.mubr.msk.f32.mxu0 %vm195_vm0, %v179_v11 }
  0x22   : > { %621 = vmatmul.mubr.msk.f32.gmra.mrb[4].mxu1 %vm195_vm0, %v566_v12  ;;  %635 = vmatmul.mubr.msk.f32.gmra.mrb[4].mxu0 %vm195_vm0, %v180_v13 }
  0x23   : > { %623 = vmatprep.mubr.msk.f32.mxu1 %vm195_vm0, %v567_v14  ;;  %637 = vmatprep.mubr.msk.f32.mxu0 %vm195_vm0, %v181_v15 }
  0x26   : > { %624 = vmatmul.mubr.msk.f32.gmra.mrb[6].mxu1 %vm195_vm0, %v568_v16  ;;  %638 = vmatmul.mubr.msk.f32.gmra.mrb[6].mxu0 %vm195_vm0, %v182_v17 }
  0xed   : > { %v616_v18 = vpop.f32.mrb[0].mxu1  ;;  %v630_v19 = vpop.f32.mrb[0].mxu0 }
  0xee   : > { %v421_v21 = vadd.f32 %v630_v19, %v616_v18  ;;  %v286_v22 = vpop.f32.mrb[1].mxu1  ;;  %v415_v23 = vpop.f32.mrb[1].mxu0 }
  0xef   : > { %v416_v24 = vadd.f32 %v415_v23, %v286_v22 }
  0xf0   : > { %v462_v25 = vadd.f32 %v586_v20, %v421_v21 }
  0xf1   : > { %v461_v26 = vadd.f32 %v586_v20, %v416_v24  ;;  %v619_v27 = vpop.f32.mrb[2].mxu1  ;;  %v633_v28 = vpop.f32.mrb[2].mxu0 }
  0xf2   : > { %470 = vst [vmem:[%s856_s10 + $0x8] sm:$0xff] %v462_v25  ;;  %v431_v29 = vadd.f32 %v633_v28, %v619_v27  ;;  %v296_v30 = vpop.f32.mrb[3].mxu1  ;;  %v425_v31 = vpop.f32.mrb[3].mxu0 }
  0xf3   : > { %469 = vst [vmem:[%s856_s10] sm:$0xff] %v461_v26  ;;  %v426_v32 = vadd.f32 %v425_v31, %v296_v30 }
  0xf4   : > { %v464_v33 = vadd.f32 %v586_v20, %v431_v29 }
  0xf5   : > { %v463_v34 = vadd.f32 %v586_v20, %v426_v32  ;;  %v622_v35 = vpop.f32.mrb[4].mxu1  ;;  %v636_v36 = vpop.f32.mrb[4].mxu0 }
  0xf6   : > { %472 = vst [vmem:[%s856_s10 + $0x18] sm:$0xff] %v464_v33  ;;  %v441_v37 = vadd.f32 %v636_v36, %v622_v35  ;;  %v306_v38 = vpop.f32.mrb[5].mxu1  ;;  %v435_v39 = vpop.f32.mrb[5].mxu0 }
  0xf7   : > { %471 = vst [vmem:[%s856_s10 + $0x10] sm:$0xff] %v463_v34  ;;  %v436_v40 = vadd.f32 %v435_v39, %v306_v38 }
  0xf8   : > { %v466_v41 = vadd.f32 %v586_v20, %v441_v37 }
  0xf9   : > { %v465_v42 = vadd.f32 %v586_v20, %v436_v40  ;;  %v625_v43 = vpop.f32.mrb[6].mxu1  ;;  %v639_v44 = vpop.f32.mrb[6].mxu0 }
  0xfa   : > { %474 = vst [vmem:[%s856_s10 + $0x28] sm:$0xff] %v466_v41  ;;  %v451_v45 = vadd.f32 %v639_v44, %v625_v43  ;;  %v316_v46 = vpop.f32.mrb[7].mxu1  ;;  %v445_v47 = vpop.f32.mrb[7].mxu0 }
  0xfb   : > { %473 = vst [vmem:[%s856_s10 + $0x20] sm:$0xff] %v465_v42  ;;  %v446_v48 = vadd.f32 %v445_v47, %v316_v46 }
  0xfc   : > { %v468_v49 = vadd.f32 %v586_v20, %v451_v45 }
  0xfd   : > { %v467_v50 = vadd.f32 %v586_v20, %v446_v48 }
  0xfe   : > { %476 = vst [vmem:[%s856_s10 + $0x38] sm:$0xff] %v468_v49 }
  0xff   : > { %475 = vst [vmem:[%s856_s10 + $0x30] sm:$0xff] %v467_v50 }
 0x100   : > { %702 = shalt.err (!%p699_p3)
}
 0x101   : > { %s703_s29 = scalar_lea.hbm %s869_s24, 1024  ;;  %s707_s5 = scalar_lea.hbm %s921_s3, 2048 }
 0x102   : > { %p704_p4 = scmp.ne.s32.totalorder %s869_s24, %s703_s29  ;;  %p708_p9 = scmp.lt.u32.totalorder %s869_s24, %s921_s3 }
 0x103   : > { %p709_p10 = scmp.lt.u32.totalorder %s707_s5, %s703_s29  ;;  %p711_p12 = scmp.lt.u32.totalorder %s703_s29, %s869_s24 }
 0x104   : > { %p705_p7 = pnand %p704_p4, %p814_p5 }
 0x105   : > { %p710_p11 = por %p709_p10, %p708_p9 }
 0x106   : > { %p706_p8 = pneg %p705_p7 }
 0x107   : > { %p712_p13 = por %p711_p12, %p710_p11 }
 0x109   : > { %p713_p0 = pnand %p712_p13, %p706_p8 }
 0x10b   : > { %716 = shalt.err (!%p713_p0)
}
 0x10c   : > { %s754_s8 = smov 128   ;;  %s755_s9 = smov 8  }
 0x10d   : > { %648 = dma.vmem_to_hbm [thread:$0]  (%p814_p5), %s871_s17, 1024, %s869_s24, %s877_s16, %s754_s8, %s754_s8, %s755_s9  }
 0x10e PF: > { %p654_p1 = scmp.ge.s32.totalorder %s751_s15, 2  ;;  %s506_s10 = sand.u32 1, %s739_s12  }
 0x10f   : > { %s507_s11 = scalar_lea.sflag [#allocation3], %s506_s10 }
 0x110   : > { %p651_p2 = pnand %p654_p1, %p818_p6 }
 0x112   : > { %734 = dma.done.wait (!%p651_p2), %s507_s11, 1024  }
 0x113   : > { %736 = vsyncadd (!%p651_p2), %s507_s11, 4294966272  ;;  %p13_p3 = scmp.ge.s32.totalorder %s801_s18, 4   ;;  %s924_s12 = smov %s743_s13 }
 0x114   : > { %s925_s13 = smov %s747_s14  ;;  %s926_s14 = smov %s812_s21 }
 0x115   : > { %s927_s15 = smov %s801_s18  ;;  %15 = sbr.rel (!%p13_p3) target bundleno = 3 (0x3), region = 69 }
 0x11c   :  { %512 = vsyncpa [#allocation3], 1 }
 0x11d   :  { %514 = vsyncpa [#allocation3 + $0x1], 1 }

</bundles_post_ra>
